<compile_context>
chip_gen: v6e
topology: v6e:2x2x1
jax: 0.10.0
libtpu: 0.0.40
codegen_flags: <defaults>
</compile_context>

<pallas_src>
import jax
import jax.numpy as jnp
from jax.experimental import pallas as pl
from jax.experimental.pallas import tpu as pltpu

_TILE_BYTES = 8 * 1024 * 1024        # per-block byte budget (perf review: v7x roofline)
_VMEM_LIMIT = 48 * 1024 * 1024       # 2 bufs x (in + out) x 8 MiB = 32 MiB + headroom


def _exp_mult_kernel(t_ref, x_ref, o_ref):
    # t_ref: (1, 1) f32 scalar in SMEM; x_ref/o_ref: (tile_rows, lane) in VMEM.
    scale = jnp.exp(t_ref[0, 0]).astype(x_ref.dtype)
    o_ref[...] = x_ref[...] * scale


def _sublane_multiple(dtype) -> int:
    # f32 -> 8, bf16 -> 16, int8/fp8 -> 32 (min second-to-last tile dim).
    return max(8, 32 // jnp.dtype(dtype).itemsize)


def _pick_tile_rows(rows: int, lane: int, dtype) -> int:
    sub = _sublane_multiple(dtype)
    itemsize = jnp.dtype(dtype).itemsize
    max_rows = max(sub, (_TILE_BYTES // (lane * itemsize)) // sub * sub)
    if rows <= sub:
        # Tiny input: one block whose row dim equals the full array dim.
        return rows
    if rows >= 2 * max_rows:
        return max_rows
    # Medium input: force >= 2 blocks so both v7x TensorCores get work from
    # the "parallel" grid axis; harmless on single-TC v5e/v6e.
    half = -(-rows // 2)
    return min(max_rows, max(sub, -(-half // sub) * sub))


def _exp_mult_2d(x2d: jax.Array, t_smem: jax.Array, tile_rows: int) -> jax.Array:
    rows, lane = x2d.shape
    grid = (pl.cdiv(rows, tile_rows),)
    return pl.pallas_call(
        _exp_mult_kernel,
        out_shape=jax.ShapeDtypeStruct((rows, lane), x2d.dtype),
        grid_spec=pltpu.PrefetchScalarGridSpec(
            num_scalar_prefetch=0,
            grid=grid,
            in_specs=[
                pl.BlockSpec(memory_space=pltpu.SMEM),               # t scalar
                pl.BlockSpec((tile_rows, lane), lambda i: (i, 0)),   # x tile
            ],
            out_specs=pl.BlockSpec((tile_rows, lane), lambda i: (i, 0)),
        ),
        compiler_params=pltpu.CompilerParams(
            dimension_semantics=("parallel",),
            vmem_limit_bytes=_VMEM_LIMIT,
        ),
    )(t_smem, x2d)


def exp_multiplier(x: jax.Array, t: jax.Array) -> jax.Array:
    """x * exp(t), t a 0-d parameter. Matches ExpMultiplier.forward."""
    orig_shape = x.shape
    dtype = x.dtype
    n = int(x.size)
    if n == 0:
        return x

    t_smem = jnp.asarray(t, dtype=jnp.float32).reshape(1, 1)

    # Pick the largest lane width that divides n exactly -> no pad, no slice.
    lane = None
    for cand in (512, 256, 128):
        if n % cand == 0:
            lane = cand
            break

    flat = x.reshape(-1)
    if lane is not None:
        rows = n // lane
        tile_rows = _pick_tile_rows(rows, lane, dtype)
        out2d = _exp_mult_2d(flat.reshape(rows, lane), t_smem, tile_rows)
        return out2d.reshape(orig_shape)

    # Ragged (n % 128 != 0): kernel on the 128-aligned prefix, tiny XLA multiply
    # for the <128-element tail. One concat copy instead of pad + slice.
    # TODO(synk): the concat still writes one extra full-size HBM copy for
    # ragged shapes; avoid by padding such tensors upstream if they get large.
    lane = 128
    n_main = (n // lane) * lane
    scale = jnp.exp(t_smem[0, 0]).astype(dtype)
    tail_out = flat[n_main:] * scale
    if n_main == 0:
        return tail_out.reshape(orig_shape)
    rows = n_main // lane
    tile_rows = _pick_tile_rows(rows, lane, dtype)
    main_out = _exp_mult_2d(flat[:n_main].reshape(rows, lane), t_smem, tile_rows)
    return jnp.concatenate([main_out.reshape(-1), tail_out]).reshape(orig_shape)


if __name__ == "__main__":
    key = jax.random.PRNGKey(0)
    kx, kr, km = jax.random.split(key, 3)

    # Parameter mirroring ExpMultiplier(initial_value=...); nonzero so the
    # multiply is nontrivial.
    initial_value = 0.5
    t = jnp.asarray(initial_value, dtype=jnp.float32)
    scale_f32 = jnp.exp(t)

    # Small NCHW input consistent with the module's usage.
    x = jax.random.normal(kx, (2, 4, 16, 16), dtype=jnp.float32)
    out = jax.block_until_ready(exp_multiplier(x, t))
    ref = x * scale_f32
    assert out.shape == x.shape and out.dtype == x.dtype
    assert jnp.allclose(out, ref, atol=1e-6, rtol=1e-5)

    # bf16 path (dtype-preserving multiply, 16-row sublane multiple).
    xb = x.astype(jnp.bfloat16)
    outb = jax.block_until_ready(exp_multiplier(xb, t))
    refb = xb * scale_f32.astype(jnp.bfloat16)
    assert outb.dtype == jnp.bfloat16
    assert jnp.allclose(outb.astype(jnp.float32), refb.astype(jnp.float32),
                        atol=1e-2, rtol=1e-2)

    # Ragged size (not a multiple of 128): prefix kernel + XLA tail.
    xr = jax.random.normal(kr, (3, 129), dtype=jnp.float32)
    outr = jax.block_until_ready(exp_multiplier(xr, t))
    assert jnp.allclose(outr, xr * scale_f32, atol=1e-6, rtol=1e-5)

    # Multi-block grid with a masked partial final row-block.
    xm = jax.random.normal(km, (20, 512), dtype=jnp.float32)
    outm = jax.block_until_ready(exp_multiplier(xm, t))
    assert jnp.allclose(outm, xm * scale_f32, atol=1e-6, rtol=1e-5)

    print("KERNEL_OK")
</pallas_src>

<mosaic_0001>
module attributes {stable_mosaic.version = 11 : i64} {
  func.func @_exp_mult_kernel(%arg0: i32, %arg1: memref<1x1xf32, #tpu.memory_space<smem>>, %arg2: memref<4x512xf32, #tpu.memory_space<vmem>>, %arg3: memref<4x512xf32, #tpu.memory_space<vmem>>) attributes {dimension_semantics = [#tpu.dimension_semantics<parallel>], iteration_bounds = array<i64: 1>, scalar_prefetch = 0 : i64, scratch_operands = 0 : i64, tpu.core_type = #tpu.core_type<tc>, window_params = [{transform_indices = @transform_0, window_bounds = array<i64: 1, 1>}, {transform_indices = @transform_1, window_bounds = array<i64: 4, 512>}, {transform_indices = @transform_2, window_bounds = array<i64: 4, 512>}]} {
    %c0 = arith.constant 0 : index
    %c0_0 = arith.constant 0 : index
    %0 = memref.load %arg1[%c0, %c0_0] : memref<1x1xf32, #tpu.memory_space<smem>>
    %1 = math.exp %0 : f32
    %c0_1 = arith.constant 0 : index
    %c0_2 = arith.constant 0 : index
    %2 = vector.load %arg2[%c0_1, %c0_2] : memref<4x512xf32, #tpu.memory_space<vmem>>, vector<4x512xf32>
    %3 = vector.broadcast %1 : f32 to vector<4x512xf32>
    %4 = arith.mulf %2, %3 : vector<4x512xf32>
    %c0_3 = arith.constant 0 : index
    %c0_4 = arith.constant 0 : index
    %5 = vector.load %arg3[%c0_3, %c0_4] : memref<4x512xf32, #tpu.memory_space<vmem>>, vector<4x512xf32>
    tpu.vector_store %arg3[%c0_3, %c0_4], %4 {strides = array<i32>} : memref<4x512xf32, #tpu.memory_space<vmem>>, vector<4x512xf32>,
    return
  }
  func.func @transform_0(%arg0: i32) -> (i32, i32) {
    %c0_i32 = arith.constant 0 : i32
    %c0_i32_0 = arith.constant 0 : i32
    %c0_i32_1 = arith.constant 0 : i32
    return %c0_i32, %c0_i32_0 : i32, i32
  }
  func.func @transform_1(%arg0: i32) -> (i32, i32) {
    %c0_i32 = arith.constant 0 : i32
    %c0_i32_0 = arith.constant 0 : i32
    return %arg0, %c0_i32 : i32, i32
  }
  func.func @transform_2(%arg0: i32) -> (i32, i32) {
    %c0_i32 = arith.constant 0 : i32
    %c0_i32_0 = arith.constant 0 : i32
    return %arg0, %c0_i32 : i32, i32
  }
}

</mosaic_0001>

<bundles_post_ra>
// kernel: tpu_custom_call.1
= control target key start
LH: loop header
LB: loop body
LE: loop exit
PB: predicated region body
PF: predicated region fallthrough
CT: control target
= control target key end

     0   :  { %8 = vsyncpa [#allocation4], 0  ;;  %s128_s0 = inlined_call_operand.<no memory space> [shape: f32[1,1], index: 0, kind: input, shape index: {}]   ;;  %s129_s1 = inlined_call_operand.hbm [shape: f32[4,512], index: 1, kind: input, shape index: {}]   ;;  %s130_s2 = inlined_call_operand.hbm [shape: f32[4,512], index: 2, kind: output, shape index: {}]  }
   0x1   :  { %9 = vsyncpa [#allocation5], 0  ;;  %s102_s9 = smov [#allocation3]  }
   0x2   :  { %s18_s10 = sshll.u32 %s102_s9, 4  ;;  %s19_s10 = int_to_ptr.vmem [resolvable:$true] %s18_s10 }
   0x3   :  { %s66_s11 = scalar_lea.vmem %s19_s10, 256  ;;  %p71_p1 = scmp.lt.s32.totalorder %s19_s10, %s19_s10 }
   0x4   :  { %p67_p0 = scmp.ne.s32.totalorder %s19_s10, %s66_s11  ;;  %p72_p2 = scmp.lt.s32.totalorder %s66_s11, %s66_s11 }
   0x6   :  { %p73_p3 = por %p72_p2, %p71_p1 }
   0x8   :  { %p74_p4 = pnand %p73_p3, %p67_p0 }
   0xa   :  { %77 = shalt.err (!%p74_p4)
}
   0xb   :  { %21 = dma.hbm_to_vmem [thread:$0]  %s129_s1, 256, %s19_s10, [#allocation4]   ;;  %v26_v0 = vstv %s128_s0 }
   0xc   :  { %98 = dma.done.wait [#allocation4], 256  }
   0xd   :  { %99 = vsyncadd [#allocation4], 4294967040  ;;  %v27_v1 = vmul.f32 1.442695, %v26_v0  ;;  %v30_v3 = vld [vmem:[#allocation3] sm:$0xff]  ;;  %v31_v4 = vld [vmem:[#allocation3 + $0x8] sm:$0xff] }
   0xe   :  { %s103_s16 = smov [#allocation6]  }
   0xf   :  { %56 = vpow2.f32 %v27_v1  ;;  %s43_s17 = sshll.u32 %s103_s16, 4  ;;  %s44_s17 = int_to_ptr.vmem [resolvable:$true] %s43_s17 }
  0x10   :  { %s78_s1 = scalar_lea.vmem %s44_s17, 256  ;;  %p83_p6 = scmp.lt.s32.totalorder %s44_s17, %s44_s17 }
  0x11   :  { %p79_p5 = scmp.ne.s32.totalorder %s44_s17, %s78_s1  ;;  %p84_p7 = scmp.lt.s32.totalorder %s78_s1, %s78_s1 }
  0x13   :  { %p85_p8 = por %p84_p7, %p83_p6 }
  0x15   :  { %p86_p9 = pnand %p85_p8, %p79_p5 }
  0x1c   :  { %v57_v2 = vpop.eup %56 }
  0x1d   :  { %52 = vpush %v57_v2 }
  0x4e   :  { %s53_s18 = spop %52 }
  0x4f   :  { %v32_v5 = vstv %s53_s18 }
  0x50   :  { %v33_v6 = vmul.f32 %v32_v5, %v30_v3  ;;  %v34_v7 = vmul.f32 %v32_v5, %v31_v4 }
  0x52   :  { %35 = vst [vmem:[#allocation6] sm:$0xff] %v33_v6  ;;  %36 = vst [vmem:[#allocation6 + $0x8] sm:$0xff] %v34_v7 }
  0x53   :  { %89 = shalt.err (!%p86_p9)
}
  0x54   :  { %46 = dma.vmem_to_hbm [thread:$0]  %s44_s17, 256, %s130_s2, [#allocation5]  }
  0x55   :  { %100 = dma.done.wait [#allocation5], 256  }
  0x56   :  { %101 = vsyncadd [#allocation5], 4294967040 }
  0x57   :  { %50 = vsyncpa [#allocation4], 1 }
  0x58   :  { %51 = vsyncpa [#allocation5], 1 }

</bundles_post_ra>
